<compile_context>
chip_gen: v7x
topology: tpu7x:2x2x1
jax: 0.10.0
libtpu: 0.0.40
codegen_flags: <defaults>
</compile_context>

<pallas_src>
import functools

import jax
import jax.numpy as jnp
from jax import lax
from jax.experimental import pallas as pl
from jax.experimental.pallas import tpu as pltpu


def _vicreg_kernel(x_ref, y_ref, o_ref,
                   acc_diff, acc_sum_x, acc_sumsq_x, acc_sum_y, acc_sumsq_y,
                   acc_gram_x, acc_gram_y,
                   *, n, d, sim_coeff, std_coeff, cov_coeff, cov_dtype):
    i = pl.program_id(0)                       # batch tile (reduction axis)

    @pl.when(i == 0)
    def _init():
        acc_diff[...] = jnp.zeros_like(acc_diff)
        acc_sum_x[...] = jnp.zeros_like(acc_sum_x)
        acc_sumsq_x[...] = jnp.zeros_like(acc_sumsq_x)
        acc_sum_y[...] = jnp.zeros_like(acc_sum_y)
        acc_sumsq_y[...] = jnp.zeros_like(acc_sumsq_y)
        acc_gram_x[...] = jnp.zeros_like(acc_gram_x)
        acc_gram_y[...] = jnp.zeros_like(acc_gram_y)

    x = x_ref[...].astype(jnp.float32)
    y = y_ref[...].astype(jnp.float32)

    # Representation (MSE) term partial: per-column sum of (x - y)^2.
    diff = x - y
    acc_diff[...] += jnp.sum(diff * diff, axis=0, keepdims=True)

    # Mean accumulators from the exact f32 values.
    acc_sum_x[...] += jnp.sum(x, axis=0, keepdims=True)
    acc_sum_y[...] += jnp.sum(y, axis=0, keepdims=True)

    # Gram inputs in cov_dtype (bf16 MXU fast path on v6e/v7x), f32 accumulate.
    xq = x.astype(cov_dtype)
    yq = y.astype(cov_dtype)
    # sum(t^2) is accumulated from the SAME quantized values the MXU consumes so
    # that diag(Gram) == acc_sumsq and the Frobenius-minus-diag cancellation in
    # the covariance term stays consistent under bf16 (f32 path is unchanged).
    xq32 = xq.astype(jnp.float32)
    yq32 = yq.astype(jnp.float32)
    acc_sumsq_x[...] += jnp.sum(xq32 * xq32, axis=0, keepdims=True)
    acc_sumsq_y[...] += jnp.sum(yq32 * yq32, axis=0, keepdims=True)

    # Uncentered Grams: contract the batch (sublane) axis directly — no transpose.
    acc_gram_x[...] += lax.dot_general(
        xq, xq, dimension_numbers=(((0,), (0,)), ((), ())),
        preferred_element_type=jnp.float32)
    acc_gram_y[...] += lax.dot_general(
        yq, yq, dimension_numbers=(((0,), (0,)), ((), ())),
        preferred_element_type=jnp.float32)

    @pl.when(i == pl.num_programs(0) - 1)
    def _finalize():
        n_f = float(n)
        inv_n = 1.0 / n_f
        inv_nm1 = 1.0 / (n_f - 1.0)
        inv_d = 1.0 / float(d)

        repr_term = jnp.sum(acc_diff[...]) * (inv_n * inv_d)

        def modality_terms(acc_sum, acc_sumsq, acc_gram):
            mu = acc_sum[...] * inv_n                              # (1, D)
            var = (acc_sumsq[...] - n_f * mu * mu) * inv_nm1       # (1, D) == diag(cov)
            std = jnp.sqrt(var + 1e-4)
            std_term = jnp.sum(jnp.maximum(1.0 - std, 0.0)) * (0.5 * inv_d)

            # ||cov||_F^2 without materializing any (D, D) temporary:
            #   ||G - n mu mu^T||_F^2 = sum(G^2) - 2n (mu G mu^T) + n^2 (sum(mu^2))^2
            # The quadratic form mu G mu^T runs on the (otherwise idle) MXU.
            # NOTE: for strongly non-centered data this expansion can lose a few
            # bits to cancellation; acceptable for an embedding-space loss.
            g = acc_gram[...]
            sum_g2 = jnp.sum(g * g)
            mu_g = lax.dot_general(
                mu, g, dimension_numbers=(((1,), (0,)), ((), ())),
                preferred_element_type=jnp.float32)                # (1, D)
            quad = jnp.sum(mu_g * mu)                              # mu G mu^T
            sum_mu2 = jnp.sum(mu * mu)
            frob = (sum_g2 - 2.0 * n_f * quad + (n_f * sum_mu2) ** 2) * (inv_nm1 * inv_nm1)
            # diag(cov) == var  ->  off-diagonal sum of squares needs no iota mask.
            cov_term = (frob - jnp.sum(var * var)) * inv_d
            return std_term, cov_term

        std_x, cov_x = modality_terms(acc_sum_x, acc_sumsq_x, acc_gram_x)
        std_y, cov_y = modality_terms(acc_sum_y, acc_sumsq_y, acc_gram_y)

        loss = (sim_coeff * repr_term
                + std_coeff * (std_x + std_y)
                + cov_coeff * (cov_x + cov_y))
        o_ref[...] = jnp.zeros_like(o_ref) + loss


def _vmem_budget_bytes():
    """Detected per-core VMEM with headroom; conservative 56 MiB fallback (v7x)."""
    try:
        cap = int(getattr(pltpu.get_tpu_info(), "vmem_capacity_bytes", 0))
        if cap > 0:
            return int(cap * 0.88)
    except Exception:
        pass
    return 56 * 1024 * 1024


def _auto_cov_dtype():
    """bf16 MXU Gram inputs (f32 accumulate) by default on v6e/v7x-class chips."""
    try:
        name = str(getattr(pltpu.get_tpu_info(), "chip_version", "")).lower()
        if any(tag in name for tag in ("v6", "v7", "6e", "7x")):
            return jnp.bfloat16
    except Exception:
        pass
    return jnp.float32


def _pick_block_n(n, d, in_itemsize, quantum, vmem_budget):
    """Largest batch tile that (a) divides n, (b) is a multiple of `quantum`
    (or is the full batch), and (c) keeps 2 inputs x 2 pipeline buffers plus both
    (D, D) Gram accumulators and finalize temps inside the VMEM budget."""
    static = 2 * d * d * 4 + d * d * 4 + 8 * d * 4 + (1 << 20)
    per_row = 2 * 2 * d * in_itemsize
    avail = vmem_budget - static
    max_rows = max(quantum, avail // per_row) if avail > 0 else quantum
    if n <= max_rows:
        return n                               # single full-batch tile
    best = None
    b = quantum
    cap = min(n, max_rows)
    while b <= cap:
        if n % b == 0:
            best = b
        b += quantum
    if best is not None:
        return best
    # No clean divisor under the budget; a single full tile stays correct.
    # TODO(synk): ragged last tile (pl.cdiv grid + row masking) for odd batch sizes.
    return n


def vicreg_loss(x, y, sim_coeff=25.0, std_coeff=25.0, cov_coeff=1.0,
                block_n=None, cov_matmul_dtype=None):
    assert x.ndim == 2 and x.shape == y.shape
    n, d = x.shape
    assert n > 1, "VICReg variance/covariance need at least 2 samples"

    if cov_matmul_dtype is None:
        cov_matmul_dtype = _auto_cov_dtype()
    quantum = 16 if cov_matmul_dtype == jnp.bfloat16 else 8

    vmem_budget = _vmem_budget_bytes()
    if block_n is None:
        block_n = _pick_block_n(n, d, x.dtype.itemsize, quantum, vmem_budget)
    assert n % block_n == 0
    assert block_n == n or block_n % 8 == 0, "batch tile must be a multiple of 8"
    n_tiles = n // block_n

    kernel = functools.partial(
        _vicreg_kernel, n=n, d=d,
        sim_coeff=float(sim_coeff), std_coeff=float(std_coeff),
        cov_coeff=float(cov_coeff), cov_dtype=cov_matmul_dtype)

    # VMEM: 2 inputs x 2 pipeline buffers x tile + 2 Grams + row stats + finalize temps.
    in_bytes = 2 * 2 * block_n * d * x.dtype.itemsize
    acc_bytes = 2 * d * d * 4 + 5 * d * 4
    fin_bytes = d * d * 4 + 8 * 128 * 4
    needed = in_bytes + acc_bytes + fin_bytes
    vmem_limit = int(min(vmem_budget, max(needed + (4 << 20), 32 << 20)))

    cost = pl.CostEstimate(
        flops=4 * n * d * d + 12 * n * d + 4 * d * d,     # two Grams dominate
        transcendentals=2 * d,                            # sqrt per column per modality
        bytes_accessed=2 * n * d * x.dtype.itemsize + 8 * 128 * 4)

    out = pl.pallas_call(
        kernel,
        out_shape=jax.ShapeDtypeStruct((8, 128), jnp.float32),
        grid_spec=pltpu.PrefetchScalarGridSpec(
            num_scalar_prefetch=0,
            grid=(n_tiles,),                               # batch-tile reduction
            in_specs=[
                pl.BlockSpec((block_n, d), lambda i: (i, 0)),   # x
                pl.BlockSpec((block_n, d), lambda i: (i, 0)),   # y
            ],
            out_specs=pl.BlockSpec((8, 128), lambda i: (0, 0)),
            scratch_shapes=[
                pltpu.VMEM((1, d), jnp.float32),    # sum (x - y)^2 per column
                pltpu.VMEM((1, d), jnp.float32),    # sum x
                pltpu.VMEM((1, d), jnp.float32),    # sum x^2 (cov-dtype consistent)
                pltpu.VMEM((1, d), jnp.float32),    # sum y
                pltpu.VMEM((1, d), jnp.float32),    # sum y^2 (cov-dtype consistent)
                pltpu.VMEM((d, d), jnp.float32),    # uncentered Gram x^T x
                pltpu.VMEM((d, d), jnp.float32),    # uncentered Gram y^T y
            ]),
        compiler_params=pltpu.CompilerParams(
            dimension_semantics=("arbitrary",),
            vmem_limit_bytes=vmem_limit),
        cost_estimate=cost,
    )(x, y)
    return out[0, 0]


def _vicreg_ref(x, y, sim_coeff=25.0, std_coeff=25.0, cov_coeff=1.0):
    # pure-JAX reference mirroring the PyTorch module
    n, d = x.shape
    repr_loss = jnp.mean((x - y) ** 2)
    xc = x - x.mean(axis=0)
    yc = y - y.mean(axis=0)
    std_x = jnp.sqrt(xc.var(axis=0, ddof=1) + 1e-4)
    std_y = jnp.sqrt(yc.var(axis=0, ddof=1) + 1e-4)
    std_loss = jnp.mean(jax.nn.relu(1 - std_x)) / 2 + jnp.mean(jax.nn.relu(1 - std_y)) / 2
    cov_x = xc.T @ xc / (n - 1)
    cov_y = yc.T @ yc / (n - 1)
    mask = 1.0 - jnp.eye(d)
    cov_loss = jnp.sum((cov_x * mask) ** 2) / d + jnp.sum((cov_y * mask) ** 2) / d
    return sim_coeff * repr_loss + std_coeff * std_loss + cov_coeff * cov_loss


if __name__ == "__main__":
    key = jax.random.PRNGKey(0)
    kx, ky = jax.random.split(key)
    N, D = 32, 128   # small (batch, embedding); D lane-dense (multiple of 128)
    x = jax.random.normal(kx, (N, D), dtype=jnp.float32)
    y = jax.random.normal(ky, (N, D), dtype=jnp.float32)

    ref = _vicreg_ref(x, y)

    # f32 MXU Gram path, auto block_n (single full-batch tile at this size); tight tol.
    loss = jax.block_until_ready(vicreg_loss(x, y, cov_matmul_dtype=jnp.float32))
    assert jnp.allclose(loss, ref, rtol=2e-3, atol=2e-3), (loss, ref)

    # Multi-tile batch reduction path (correctness check of the accumulators).
    loss_tiled = jax.block_until_ready(
        vicreg_loss(x, y, block_n=16, cov_matmul_dtype=jnp.float32))
    assert jnp.allclose(loss_tiled, ref, rtol=2e-3, atol=2e-3), (loss_tiled, ref)

    # Generation-aware default (bf16 Gram inputs on v6e/v7x, f32 elsewhere); loose tol.
    loss_auto = jax.block_until_ready(vicreg_loss(x, y))
    assert jnp.allclose(loss_auto, ref, rtol=3e-2, atol=3e-2), (loss_auto, ref)

    # Explicit bf16-input / f32-accumulate Gram (MXU fast path); loose tol.
    loss_bf16 = jax.block_until_ready(
        vicreg_loss(x, y, cov_matmul_dtype=jnp.bfloat16))
    assert jnp.allclose(loss_bf16, ref, rtol=3e-2, atol=3e-2), (loss_bf16, ref)

    print("KERNEL_OK")
</pallas_src>

<mosaic_0001>
module attributes {stable_mosaic.version = 11 : i64} {
  func.func @_vicreg_kernel(%arg0: i32, %arg1: memref<32x128xf32, #tpu.memory_space<vmem>>, %arg2: memref<32x128xf32, #tpu.memory_space<vmem>>, %arg3: memref<8x128xf32, #tpu.memory_space<vmem>>, %arg4: memref<1x128xf32, #tpu.memory_space<vmem>>, %arg5: memref<1x128xf32, #tpu.memory_space<vmem>>, %arg6: memref<1x128xf32, #tpu.memory_space<vmem>>, %arg7: memref<1x128xf32, #tpu.memory_space<vmem>>, %arg8: memref<1x128xf32, #tpu.memory_space<vmem>>, %arg9: memref<128x128xf32, #tpu.memory_space<vmem>>, %arg10: memref<128x128xf32, #tpu.memory_space<vmem>>) attributes {dimension_semantics = [#tpu.dimension_semantics<arbitrary>], iteration_bounds = array<i64: 1>, scalar_prefetch = 0 : i64, scratch_operands = 7 : i64, tpu.core_type = #tpu.core_type<tc>, window_params = [{transform_indices = @transform_0, window_bounds = array<i64: 32, 128>}, {transform_indices = @transform_1, window_bounds = array<i64: 32, 128>}, {pipeline_mode = #tpu.pipeline_mode<synchronous>, transform_indices = @transform_2, window_bounds = array<i64: 8, 128>}]} {
    %c0_i32 = arith.constant 0 : i32
    %0 = arith.cmpi eq, %arg0, %c0_i32 : i32
    %1 = arith.extui %0 : i1 to i32
    %c0_i32_0 = arith.constant 0 : i32
    %2 = arith.cmpi ne, %1, %c0_i32_0 : i32
    scf.if %2 {
      %cst_40 = arith.constant 0.000000e+00 : f32
      %45 = vector.broadcast %cst_40 : f32 to vector<1x128xf32>
      %c0_41 = arith.constant 0 : index
      %c0_42 = arith.constant 0 : index
      %46 = vector.load %arg4[%c0_41, %c0_42] : memref<1x128xf32, #tpu.memory_space<vmem>>, vector<1x128xf32>
      tpu.vector_store %arg4[%c0_41, %c0_42], %45 {strides = array<i32>} : memref<1x128xf32, #tpu.memory_space<vmem>>, vector<1x128xf32>,
      %cst_43 = arith.constant 0.000000e+00 : f32
      %47 = vector.broadcast %cst_43 : f32 to vector<1x128xf32>
      %c0_44 = arith.constant 0 : index
      %c0_45 = arith.constant 0 : index
      %48 = vector.load %arg5[%c0_44, %c0_45] : memref<1x128xf32, #tpu.memory_space<vmem>>, vector<1x128xf32>
      tpu.vector_store %arg5[%c0_44, %c0_45], %47 {strides = array<i32>} : memref<1x128xf32, #tpu.memory_space<vmem>>, vector<1x128xf32>,
      %cst_46 = arith.constant 0.000000e+00 : f32
      %49 = vector.broadcast %cst_46 : f32 to vector<1x128xf32>
      %c0_47 = arith.constant 0 : index
      %c0_48 = arith.constant 0 : index
      %50 = vector.load %arg6[%c0_47, %c0_48] : memref<1x128xf32, #tpu.memory_space<vmem>>, vector<1x128xf32>
      tpu.vector_store %arg6[%c0_47, %c0_48], %49 {strides = array<i32>} : memref<1x128xf32, #tpu.memory_space<vmem>>, vector<1x128xf32>,
      %cst_49 = arith.constant 0.000000e+00 : f32
      %51 = vector.broadcast %cst_49 : f32 to vector<1x128xf32>
      %c0_50 = arith.constant 0 : index
      %c0_51 = arith.constant 0 : index
      %52 = vector.load %arg7[%c0_50, %c0_51] : memref<1x128xf32, #tpu.memory_space<vmem>>, vector<1x128xf32>
      tpu.vector_store %arg7[%c0_50, %c0_51], %51 {strides = array<i32>} : memref<1x128xf32, #tpu.memory_space<vmem>>, vector<1x128xf32>,
      %cst_52 = arith.constant 0.000000e+00 : f32
      %53 = vector.broadcast %cst_52 : f32 to vector<1x128xf32>
      %c0_53 = arith.constant 0 : index
      %c0_54 = arith.constant 0 : index
      %54 = vector.load %arg8[%c0_53, %c0_54] : memref<1x128xf32, #tpu.memory_space<vmem>>, vector<1x128xf32>
      tpu.vector_store %arg8[%c0_53, %c0_54], %53 {strides = array<i32>} : memref<1x128xf32, #tpu.memory_space<vmem>>, vector<1x128xf32>,
      %cst_55 = arith.constant 0.000000e+00 : f32
      %55 = vector.broadcast %cst_55 : f32 to vector<128x128xf32>
      %c0_56 = arith.constant 0 : index
      %c0_57 = arith.constant 0 : index
      %56 = vector.load %arg9[%c0_56, %c0_57] : memref<128x128xf32, #tpu.memory_space<vmem>>, vector<128x128xf32>
      tpu.vector_store %arg9[%c0_56, %c0_57], %55 {strides = array<i32>} : memref<128x128xf32, #tpu.memory_space<vmem>>, vector<128x128xf32>,
      %cst_58 = arith.constant 0.000000e+00 : f32
      %57 = vector.broadcast %cst_58 : f32 to vector<128x128xf32>
      %c0_59 = arith.constant 0 : index
      %c0_60 = arith.constant 0 : index
      %58 = vector.load %arg10[%c0_59, %c0_60] : memref<128x128xf32, #tpu.memory_space<vmem>>, vector<128x128xf32>
      tpu.vector_store %arg10[%c0_59, %c0_60], %57 {strides = array<i32>} : memref<128x128xf32, #tpu.memory_space<vmem>>, vector<128x128xf32>,
    } else {
    }
    %c0 = arith.constant 0 : index
    %c0_1 = arith.constant 0 : index
    %3 = vector.load %arg1[%c0, %c0_1] : memref<32x128xf32, #tpu.memory_space<vmem>>, vector<32x128xf32>
    %c0_2 = arith.constant 0 : index
    %c0_3 = arith.constant 0 : index
    %4 = vector.load %arg2[%c0_2, %c0_3] : memref<32x128xf32, #tpu.memory_space<vmem>>, vector<32x128xf32>
    %5 = arith.subf %3, %4 : vector<32x128xf32>
    %c0_4 = arith.constant 0 : index
    %c0_5 = arith.constant 0 : index
    %6 = vector.load %arg4[%c0_4, %c0_5] : memref<1x128xf32, #tpu.memory_space<vmem>>, vector<1x128xf32>
    %7 = arith.mulf %5, %5 : vector<32x128xf32>
    %cst = arith.constant dense<0.000000e+00> : vector<128xf32>
    %8 = vector.multi_reduction <add>, %7, %cst [0] : vector<32x128xf32> to vector<128xf32>
    %9 = vector.shape_cast %8 : vector<128xf32> to vector<1x128xf32>
    %10 = arith.addf %6, %9 : vector<1x128xf32>
    %c0_6 = arith.constant 0 : index
    %c0_7 = arith.constant 0 : index
    %11 = vector.load %arg4[%c0_6, %c0_7] : memref<1x128xf32, #tpu.memory_space<vmem>>, vector<1x128xf32>
    tpu.vector_store %arg4[%c0_6, %c0_7], %10 {strides = array<i32>} : memref<1x128xf32, #tpu.memory_space<vmem>>, vector<1x128xf32>,
    %c0_8 = arith.constant 0 : index
    %c0_9 = arith.constant 0 : index
    %12 = vector.load %arg5[%c0_8, %c0_9] : memref<1x128xf32, #tpu.memory_space<vmem>>, vector<1x128xf32>
    %cst_10 = arith.constant dense<0.000000e+00> : vector<128xf32>
    %13 = vector.multi_reduction <add>, %3, %cst_10 [0] : vector<32x128xf32> to vector<128xf32>
    %14 = vector.shape_cast %13 : vector<128xf32> to vector<1x128xf32>
    %15 = arith.addf %12, %14 : vector<1x128xf32>
    %c0_11 = arith.constant 0 : index
    %c0_12 = arith.constant 0 : index
    %16 = vector.load %arg5[%c0_11, %c0_12] : memref<1x128xf32, #tpu.memory_space<vmem>>, vector<1x128xf32>
    tpu.vector_store %arg5[%c0_11, %c0_12], %15 {strides = array<i32>} : memref<1x128xf32, #tpu.memory_space<vmem>>, vector<1x128xf32>,
    %c0_13 = arith.constant 0 : index
    %c0_14 = arith.constant 0 : index
    %17 = vector.load %arg7[%c0_13, %c0_14] : memref<1x128xf32, #tpu.memory_space<vmem>>, vector<1x128xf32>
    %cst_15 = arith.constant dense<0.000000e+00> : vector<128xf32>
    %18 = vector.multi_reduction <add>, %4, %cst_15 [0] : vector<32x128xf32> to vector<128xf32>
    %19 = vector.shape_cast %18 : vector<128xf32> to vector<1x128xf32>
    %20 = arith.addf %17, %19 : vector<1x128xf32>
    %c0_16 = arith.constant 0 : index
    %c0_17 = arith.constant 0 : index
    %21 = vector.load %arg7[%c0_16, %c0_17] : memref<1x128xf32, #tpu.memory_space<vmem>>, vector<1x128xf32>
    tpu.vector_store %arg7[%c0_16, %c0_17], %20 {strides = array<i32>} : memref<1x128xf32, #tpu.memory_space<vmem>>, vector<1x128xf32>,
    %c0_18 = arith.constant 0 : index
    %c0_19 = arith.constant 0 : index
    %22 = vector.load %arg6[%c0_18, %c0_19] : memref<1x128xf32, #tpu.memory_space<vmem>>, vector<1x128xf32>
    %23 = arith.mulf %3, %3 : vector<32x128xf32>
    %cst_20 = arith.constant dense<0.000000e+00> : vector<128xf32>
    %24 = vector.multi_reduction <add>, %23, %cst_20 [0] : vector<32x128xf32> to vector<128xf32>
    %25 = vector.shape_cast %24 : vector<128xf32> to vector<1x128xf32>
    %26 = arith.addf %22, %25 : vector<1x128xf32>
    %c0_21 = arith.constant 0 : index
    %c0_22 = arith.constant 0 : index
    %27 = vector.load %arg6[%c0_21, %c0_22] : memref<1x128xf32, #tpu.memory_space<vmem>>, vector<1x128xf32>
    tpu.vector_store %arg6[%c0_21, %c0_22], %26 {strides = array<i32>} : memref<1x128xf32, #tpu.memory_space<vmem>>, vector<1x128xf32>,
    %c0_23 = arith.constant 0 : index
    %c0_24 = arith.constant 0 : index
    %28 = vector.load %arg8[%c0_23, %c0_24] : memref<1x128xf32, #tpu.memory_space<vmem>>, vector<1x128xf32>
    %29 = arith.mulf %4, %4 : vector<32x128xf32>
    %cst_25 = arith.constant dense<0.000000e+00> : vector<128xf32>
    %30 = vector.multi_reduction <add>, %29, %cst_25 [0] : vector<32x128xf32> to vector<128xf32>
    %31 = vector.shape_cast %30 : vector<128xf32> to vector<1x128xf32>
    %32 = arith.addf %28, %31 : vector<1x128xf32>
    %c0_26 = arith.constant 0 : index
    %c0_27 = arith.constant 0 : index
    %33 = vector.load %arg8[%c0_26, %c0_27] : memref<1x128xf32, #tpu.memory_space<vmem>>, vector<1x128xf32>
    tpu.vector_store %arg8[%c0_26, %c0_27], %32 {strides = array<i32>} : memref<1x128xf32, #tpu.memory_space<vmem>>, vector<1x128xf32>,
    %c0_28 = arith.constant 0 : index
    %c0_29 = arith.constant 0 : index
    %34 = vector.load %arg9[%c0_28, %c0_29] : memref<128x128xf32, #tpu.memory_space<vmem>>, vector<128x128xf32>
    %cst_30 = arith.constant dense<0.000000e+00> : vector<128x128xf32>
    %35 = tpu.matmul %3, %3, %cst_30 {dimension_numbers = #tpu.dot_dimension_numbers<[0], [0], [1], [1], [0, 1, 1, 1], [], []>} : vector<32x128xf32>, vector<32x128xf32>, vector<128x128xf32> -> vector<128x128xf32>
    %36 = arith.addf %34, %35 : vector<128x128xf32>
    %c0_31 = arith.constant 0 : index
    %c0_32 = arith.constant 0 : index
    %37 = vector.load %arg9[%c0_31, %c0_32] : memref<128x128xf32, #tpu.memory_space<vmem>>, vector<128x128xf32>
    tpu.vector_store %arg9[%c0_31, %c0_32], %36 {strides = array<i32>} : memref<128x128xf32, #tpu.memory_space<vmem>>, vector<128x128xf32>,
    %c0_33 = arith.constant 0 : index
    %c0_34 = arith.constant 0 : index
    %38 = vector.load %arg10[%c0_33, %c0_34] : memref<128x128xf32, #tpu.memory_space<vmem>>, vector<128x128xf32>
    %cst_35 = arith.constant dense<0.000000e+00> : vector<128x128xf32>
    %39 = tpu.matmul %4, %4, %cst_35 {dimension_numbers = #tpu.dot_dimension_numbers<[0], [0], [1], [1], [0, 1, 1, 1], [], []>} : vector<32x128xf32>, vector<32x128xf32>, vector<128x128xf32> -> vector<128x128xf32>
    %40 = arith.addf %38, %39 : vector<128x128xf32>
    %c0_36 = arith.constant 0 : index
    %c0_37 = arith.constant 0 : index
    %41 = vector.load %arg10[%c0_36, %c0_37] : memref<128x128xf32, #tpu.memory_space<vmem>>, vector<128x128xf32>
    tpu.vector_store %arg10[%c0_36, %c0_37], %40 {strides = array<i32>} : memref<128x128xf32, #tpu.memory_space<vmem>>, vector<128x128xf32>,
    %c0_i32_38 = arith.constant 0 : i32
    %42 = arith.cmpi eq, %arg0, %c0_i32_38 : i32
    %43 = arith.extui %42 : i1 to i32
    %c0_i32_39 = arith.constant 0 : i32
    %44 = arith.cmpi ne, %43, %c0_i32_39 : i32
    scf.if %44 {
      %c0_40 = arith.constant 0 : index
      %c0_41 = arith.constant 0 : index
      %45 = vector.load %arg4[%c0_40, %c0_41] : memref<1x128xf32, #tpu.memory_space<vmem>>, vector<1x128xf32>
      %46 = vector.shape_cast %45 : vector<1x128xf32> to vector<1x1x128xf32>
      %cst_42 = arith.constant dense<0.000000e+00> : vector<1xf32>
      %47 = vector.multi_reduction <add>, %46, %cst_42 [1, 2] : vector<1x1x128xf32> to vector<1xf32>
      %48 = vector.shape_cast %47 : vector<1xf32> to vector<1x1x1xf32>
      %49 = vector.extract %48[0, 0, 0] : f32 from vector<1x1x1xf32>
      %cst_43 = arith.constant 2.44140625E-4 : f32
      %50 = arith.mulf %49, %cst_43 : f32
      %c0_44 = arith.constant 0 : index
      %c0_45 = arith.constant 0 : index
      %51 = vector.load %arg5[%c0_44, %c0_45] : memref<1x128xf32, #tpu.memory_space<vmem>>, vector<1x128xf32>
      %cst_46 = arith.constant 3.125000e-02 : f32
      %52 = vector.broadcast %cst_46 : f32 to vector<1x128xf32>
      %53 = arith.mulf %51, %52 : vector<1x128xf32>
      %c0_47 = arith.constant 0 : index
      %c0_48 = arith.constant 0 : index
      %54 = vector.load %arg6[%c0_47, %c0_48] : memref<1x128xf32, #tpu.memory_space<vmem>>, vector<1x128xf32>
      %cst_49 = arith.constant 3.200000e+01 : f32
      %55 = vector.broadcast %cst_49 : f32 to vector<1x128xf32>
      %56 = arith.mulf %55, %53 : vector<1x128xf32>
      %57 = arith.mulf %56, %53 : vector<1x128xf32>
      %58 = arith.subf %54, %57 : vector<1x128xf32>
      %cst_50 = arith.constant 0.0322580636 : f32
      %59 = vector.broadcast %cst_50 : f32 to vector<1x128xf32>
      %60 = arith.mulf %58, %59 : vector<1x128xf32>
      %cst_51 = arith.constant 9.99999974E-5 : f32
      %61 = vector.broadcast %cst_51 : f32 to vector<1x128xf32>
      %62 = arith.addf %60, %61 : vector<1x128xf32>
      %63 = math.sqrt %62 : vector<1x128xf32>
      %cst_52 = arith.constant 1.000000e+00 : f32
      %64 = vector.broadcast %cst_52 : f32 to vector<1x128xf32>
      %65 = arith.subf %64, %63 : vector<1x128xf32>
      %cst_53 = arith.constant 0.000000e+00 : f32
      %66 = vector.broadcast %cst_53 : f32 to vector<1x128xf32>
      %67 = arith.maximumf %65, %66 : vector<1x128xf32>
      %68 = vector.shape_cast %67 : vector<1x128xf32> to vector<1x1x128xf32>
      %cst_54 = arith.constant dense<0.000000e+00> : vector<1xf32>
      %69 = vector.multi_reduction <add>, %68, %cst_54 [1, 2] : vector<1x1x128xf32> to vector<1xf32>
      %70 = vector.shape_cast %69 : vector<1xf32> to vector<1x1x1xf32>
      %71 = vector.extract %70[0, 0, 0] : f32 from vector<1x1x1xf32>
      %cst_55 = arith.constant 3.906250e-03 : f32
      %72 = arith.mulf %71, %cst_55 : f32
      %c0_56 = arith.constant 0 : index
      %c0_57 = arith.constant 0 : index
      %73 = vector.load %arg9[%c0_56, %c0_57] : memref<128x128xf32, #tpu.memory_space<vmem>>, vector<128x128xf32>
      %74 = arith.mulf %73, %73 : vector<128x128xf32>
      %75 = vector.shape_cast %74 : vector<128x128xf32> to vector<1x128x128xf32>
      %cst_58 = arith.constant dense<0.000000e+00> : vector<1xf32>
      %76 = vector.multi_reduction <add>, %75, %cst_58 [1, 2] : vector<1x128x128xf32> to vector<1xf32>
      %77 = vector.shape_cast %76 : vector<1xf32> to vector<1x1x1xf32>
      %78 = vector.extract %77[0, 0, 0] : f32 from vector<1x1x1xf32>
      %cst_59 = arith.constant dense<0.000000e+00> : vector<1x128xf32>
      %79 = tpu.matmul %53, %73, %cst_59 {dimension_numbers = #tpu.dot_dimension_numbers<[1], [0], [0], [1], [0, 0, 1, 1], [], []>} : vector<1x128xf32>, vector<128x128xf32>, vector<1x128xf32> -> vector<1x128xf32>
      %80 = arith.mulf %79, %53 : vector<1x128xf32>
      %81 = vector.shape_cast %80 : vector<1x128xf32> to vector<1x1x128xf32>
      %cst_60 = arith.constant dense<0.000000e+00> : vector<1xf32>
      %82 = vector.multi_reduction <add>, %81, %cst_60 [1, 2] : vector<1x1x128xf32> to vector<1xf32>
      %83 = vector.shape_cast %82 : vector<1xf32> to vector<1x1x1xf32>
      %84 = vector.extract %83[0, 0, 0] : f32 from vector<1x1x1xf32>
      %85 = arith.mulf %53, %53 : vector<1x128xf32>
      %86 = vector.shape_cast %85 : vector<1x128xf32> to vector<1x1x128xf32>
      %cst_61 = arith.constant dense<0.000000e+00> : vector<1xf32>
      %87 = vector.multi_reduction <add>, %86, %cst_61 [1, 2] : vector<1x1x128xf32> to vector<1xf32>
      %88 = vector.shape_cast %87 : vector<1xf32> to vector<1x1x1xf32>
      %89 = vector.extract %88[0, 0, 0] : f32 from vector<1x1x1xf32>
      %cst_62 = arith.constant 6.400000e+01 : f32
      %90 = arith.mulf %cst_62, %84 : f32
      %91 = arith.subf %78, %90 : f32
      %cst_63 = arith.constant 3.200000e+01 : f32
      %92 = arith.mulf %cst_63, %89 : f32
      %93 = arith.mulf %92, %92 : f32
      %94 = arith.addf %91, %93 : f32
      %cst_64 = arith.constant 0.00104058278 : f32
      %95 = arith.mulf %94, %cst_64 : f32
      %96 = arith.mulf %60, %60 : vector<1x128xf32>
      %97 = vector.shape_cast %96 : vector<1x128xf32> to vector<1x1x128xf32>
      %cst_65 = arith.constant dense<0.000000e+00> : vector<1xf32>
      %98 = vector.multi_reduction <add>, %97, %cst_65 [1, 2] : vector<1x1x128xf32> to vector<1xf32>
      %99 = vector.shape_cast %98 : vector<1xf32> to vector<1x1x1xf32>
      %100 = vector.extract %99[0, 0, 0] : f32 from vector<1x1x1xf32>
      %101 = arith.subf %95, %100 : f32
      %cst_66 = arith.constant 7.812500e-03 : f32
      %102 = arith.mulf %101, %cst_66 : f32
      %c0_67 = arith.constant 0 : index
      %c0_68 = arith.constant 0 : index
      %103 = vector.load %arg7[%c0_67, %c0_68] : memref<1x128xf32, #tpu.memory_space<vmem>>, vector<1x128xf32>
      %cst_69 = arith.constant 3.125000e-02 : f32
      %104 = vector.broadcast %cst_69 : f32 to vector<1x128xf32>
      %105 = arith.mulf %103, %104 : vector<1x128xf32>
      %c0_70 = arith.constant 0 : index
      %c0_71 = arith.constant 0 : index
      %106 = vector.load %arg8[%c0_70, %c0_71] : memref<1x128xf32, #tpu.memory_space<vmem>>, vector<1x128xf32>
      %cst_72 = arith.constant 3.200000e+01 : f32
      %107 = vector.broadcast %cst_72 : f32 to vector<1x128xf32>
      %108 = arith.mulf %107, %105 : vector<1x128xf32>
      %109 = arith.mulf %108, %105 : vector<1x128xf32>
      %110 = arith.subf %106, %109 : vector<1x128xf32>
      %cst_73 = arith.constant 0.0322580636 : f32
      %111 = vector.broadcast %cst_73 : f32 to vector<1x128xf32>
      %112 = arith.mulf %110, %111 : vector<1x128xf32>
      %cst_74 = arith.constant 9.99999974E-5 : f32
      %113 = vector.broadcast %cst_74 : f32 to vector<1x128xf32>
      %114 = arith.addf %112, %113 : vector<1x128xf32>
      %115 = math.sqrt %114 : vector<1x128xf32>
      %cst_75 = arith.constant 1.000000e+00 : f32
      %116 = vector.broadcast %cst_75 : f32 to vector<1x128xf32>
      %117 = arith.subf %116, %115 : vector<1x128xf32>
      %cst_76 = arith.constant 0.000000e+00 : f32
      %118 = vector.broadcast %cst_76 : f32 to vector<1x128xf32>
      %119 = arith.maximumf %117, %118 : vector<1x128xf32>
      %120 = vector.shape_cast %119 : vector<1x128xf32> to vector<1x1x128xf32>
      %cst_77 = arith.constant dense<0.000000e+00> : vector<1xf32>
      %121 = vector.multi_reduction <add>, %120, %cst_77 [1, 2] : vector<1x1x128xf32> to vector<1xf32>
      %122 = vector.shape_cast %121 : vector<1xf32> to vector<1x1x1xf32>
      %123 = vector.extract %122[0, 0, 0] : f32 from vector<1x1x1xf32>
      %cst_78 = arith.constant 3.906250e-03 : f32
      %124 = arith.mulf %123, %cst_78 : f32
      %c0_79 = arith.constant 0 : index
      %c0_80 = arith.constant 0 : index
      %125 = vector.load %arg10[%c0_79, %c0_80] : memref<128x128xf32, #tpu.memory_space<vmem>>, vector<128x128xf32>
      %126 = arith.mulf %125, %125 : vector<128x128xf32>
      %127 = vector.shape_cast %126 : vector<128x128xf32> to vector<1x128x128xf32>
      %cst_81 = arith.constant dense<0.000000e+00> : vector<1xf32>
      %128 = vector.multi_reduction <add>, %127, %cst_81 [1, 2] : vector<1x128x128xf32> to vector<1xf32>
      %129 = vector.shape_cast %128 : vector<1xf32> to vector<1x1x1xf32>
      %130 = vector.extract %129[0, 0, 0] : f32 from vector<1x1x1xf32>
      %cst_82 = arith.constant dense<0.000000e+00> : vector<1x128xf32>
      %131 = tpu.matmul %105, %125, %cst_82 {dimension_numbers = #tpu.dot_dimension_numbers<[1], [0], [0], [1], [0, 0, 1, 1], [], []>} : vector<1x128xf32>, vector<128x128xf32>, vector<1x128xf32> -> vector<1x128xf32>
      %132 = arith.mulf %131, %105 : vector<1x128xf32>
      %133 = vector.shape_cast %132 : vector<1x128xf32> to vector<1x1x128xf32>
      %cst_83 = arith.constant dense<0.000000e+00> : vector<1xf32>
      %134 = vector.multi_reduction <add>, %133, %cst_83 [1, 2] : vector<1x1x128xf32> to vector<1xf32>
      %135 = vector.shape_cast %134 : vector<1xf32> to vector<1x1x1xf32>
      %136 = vector.extract %135[0, 0, 0] : f32 from vector<1x1x1xf32>
      %137 = arith.mulf %105, %105 : vector<1x128xf32>
      %138 = vector.shape_cast %137 : vector<1x128xf32> to vector<1x1x128xf32>
      %cst_84 = arith.constant dense<0.000000e+00> : vector<1xf32>
      %139 = vector.multi_reduction <add>, %138, %cst_84 [1, 2] : vector<1x1x128xf32> to vector<1xf32>
      %140 = vector.shape_cast %139 : vector<1xf32> to vector<1x1x1xf32>
      %141 = vector.extract %140[0, 0, 0] : f32 from vector<1x1x1xf32>
      %cst_85 = arith.constant 6.400000e+01 : f32
      %142 = arith.mulf %cst_85, %136 : f32
      %143 = arith.subf %130, %142 : f32
      %cst_86 = arith.constant 3.200000e+01 : f32
      %144 = arith.mulf %cst_86, %141 : f32
      %145 = arith.mulf %144, %144 : f32
      %146 = arith.addf %143, %145 : f32
      %cst_87 = arith.constant 0.00104058278 : f32
      %147 = arith.mulf %146, %cst_87 : f32
      %148 = arith.mulf %112, %112 : vector<1x128xf32>
      %149 = vector.shape_cast %148 : vector<1x128xf32> to vector<1x1x128xf32>
      %cst_88 = arith.constant dense<0.000000e+00> : vector<1xf32>
      %150 = vector.multi_reduction <add>, %149, %cst_88 [1, 2] : vector<1x1x128xf32> to vector<1xf32>
      %151 = vector.shape_cast %150 : vector<1xf32> to vector<1x1x1xf32>
      %152 = vector.extract %151[0, 0, 0] : f32 from vector<1x1x1xf32>
      %153 = arith.subf %147, %152 : f32
      %cst_89 = arith.constant 7.812500e-03 : f32
      %154 = arith.mulf %153, %cst_89 : f32
      %cst_90 = arith.constant 2.500000e+01 : f32
      %155 = arith.mulf %cst_90, %50 : f32
      %156 = arith.addf %72, %124 : f32
      %cst_91 = arith.constant 2.500000e+01 : f32
      %157 = arith.mulf %cst_91, %156 : f32
      %158 = arith.addf %155, %157 : f32
      %159 = arith.addf %102, %154 : f32
      %cst_92 = arith.constant 1.000000e+00 : f32
      %160 = arith.mulf %cst_92, %159 : f32
      %161 = arith.addf %158, %160 : f32
      %cst_93 = arith.constant 0.000000e+00 : f32
      %162 = vector.broadcast %cst_93 : f32 to vector<8x128xf32>
      %163 = vector.broadcast %161 : f32 to vector<8x128xf32>
      %164 = arith.addf %162, %163 : vector<8x128xf32>
      %c0_94 = arith.constant 0 : index
      %c0_95 = arith.constant 0 : index
      %165 = vector.load %arg3[%c0_94, %c0_95] : memref<8x128xf32, #tpu.memory_space<vmem>>, vector<8x128xf32>
      tpu.vector_store %arg3[%c0_94, %c0_95], %164 {strides = array<i32>} : memref<8x128xf32, #tpu.memory_space<vmem>>, vector<8x128xf32>,
    } else {
    }
    return
  }
  func.func @transform_0(%arg0: i32) -> (i32, i32) {
    %c0_i32 = arith.constant 0 : i32
    %c0_i32_0 = arith.constant 0 : i32
    return %arg0, %c0_i32 : i32, i32
  }
  func.func @transform_1(%arg0: i32) -> (i32, i32) {
    %c0_i32 = arith.constant 0 : i32
    %c0_i32_0 = arith.constant 0 : i32
    return %arg0, %c0_i32 : i32, i32
  }
  func.func @transform_2(%arg0: i32) -> (i32, i32) {
    %c0_i32 = arith.constant 0 : i32
    %c0_i32_0 = arith.constant 0 : i32
    %c0_i32_1 = arith.constant 0 : i32
    return %c0_i32, %c0_i32_0 : i32, i32
  }
}

</mosaic_0001>

<bundles_post_ra>
// kernel: tpu_custom_call.1
= control target key start
LH: loop header
LB: loop body
LE: loop exit
PB: predicated region body
PF: predicated region fallthrough
CT: control target
= control target key end

     0   :  { %7 = vsyncpa [#allocation10], 0  ;;  %s1695_s0 = inlined_call_operand.hbm [shape: f32[32,128], index: 0, kind: input, shape index: {}]   ;;  %s1696_s1 = inlined_call_operand.hbm [shape: f32[32,128], index: 1, kind: input, shape index: {}]   ;;  %s1697_s2 = inlined_call_operand.hbm [shape: f32[8,128], index: 2, kind: output, shape index: {}]  }
   0x1   :  { %8 = vsyncpa [#allocation13], 0 }
   0x2   :  { %9 = vsyncpa [#allocation11], 0  ;;  %s1553_s9 = smov [#allocation9]   ;;  %s1481_s13 = scalar_lea.hbm %s1695_s0, 512 }
   0x3   :  { %s15_s10 = sshll.u32 %s1553_s9, 4  ;;  %p1482_p0 = scmp.ne.s32.totalorder %s1695_s0, %s1481_s13  ;;  %s16_s10 = int_to_ptr.vmem [resolvable:$true] %s15_s10 }
   0x4   :  { %p1485_p1 = scmp.lt.u32.totalorder %s1481_s13, %s1695_s0 }
   0x6   :  { %p1487_p2 = pnand %p1485_p1, %p1482_p0 }
   0x8   :  { %1490 = shalt.err (!%p1487_p2)
}
   0x9   :  { %s1491_s18 = scalar_lea.vmem %s16_s10, 512  ;;  %p1496_p4 = scmp.lt.s32.totalorder %s16_s10, %s16_s10 }
   0xa   :  { %p1492_p3 = scmp.ne.s32.totalorder %s16_s10, %s1491_s18  ;;  %p1497_p5 = scmp.lt.s32.totalorder %s1491_s18, %s1491_s18 }
   0xc   :  { %p1498_p6 = por %p1497_p5, %p1496_p4 }
   0xe   :  { %p1499_p7 = pnand %p1498_p6, %p1492_p3 }
  0x10   :  { %1502 = shalt.err (!%p1499_p7)
}
  0x11   :  { %s1554_s19 = smov 128   ;;  %s1555_s20 = smov 8  }
  0x12   :  { %21 = dma.hbm_to_vmem [thread:$0]  %s1695_s0, 512, %s16_s10, [#allocation10], %s1554_s19, %s1554_s19, %s1555_s20  }
  0x13   :  { %s1556_s23 = smov [#allocation12]   ;;  %s1503_s27 = scalar_lea.hbm %s1696_s1, 512 }
  0x14   :  { %s27_s24 = sshll.u32 %s1556_s23, 4  ;;  %p1504_p8 = scmp.ne.s32.totalorder %s1696_s1, %s1503_s27  ;;  %s28_s24 = int_to_ptr.vmem [resolvable:$true] %s27_s24 }
  0x15   :  { %p1507_p9 = scmp.lt.u32.totalorder %s1503_s27, %s1696_s1 }
  0x17   :  { %p1509_p10 = pnand %p1507_p9, %p1504_p8 }
  0x19   :  { %1512 = shalt.err (!%p1509_p10)
}
  0x1a   :  { %s1513_s4 = scalar_lea.vmem %s28_s24, 512  ;;  %p1518_p12 = scmp.lt.s32.totalorder %s28_s24, %s28_s24 }
  0x1b   :  { %p1514_p11 = scmp.ne.s32.totalorder %s28_s24, %s1513_s4  ;;  %p1519_p13 = scmp.lt.s32.totalorder %s1513_s4, %s1513_s4 }
  0x1d   :  { %p1520_p0 = por %p1519_p13, %p1518_p12 }
  0x1f   :  { %p1521_p1 = pnand %p1520_p0, %p1514_p11 }
  0x21   :  { %1524 = shalt.err (!%p1521_p1)
}
  0x22   :  { %33 = dma.hbm_to_vmem [thread:$0]  %s1696_s1, 512, %s28_s24, [#allocation13], %s1554_s19, %s1554_s19, %s1555_s20  }
  0x23   :  { %1547 = dma.done.wait [#allocation10], 512  }
  0x24   :  { %1548 = vsyncadd [#allocation10], 4294966784 }
  0x25   :  { %1549 = dma.done.wait [#allocation13], 512  }
  0x26   :  { %1550 = vsyncadd [#allocation13], 4294966784  ;;  %v1557_v0 = vmov 0.0   ;;  %v85_v1 = vld [vmem:[#allocation12] sm:$0xff]  ;;  %v86_v6 = vld [vmem:[#allocation12 + $0x8] sm:$0xff]  ;;  %vm213_vm0 = vcmask 261120  }
  0x27   :  { %47 = vst [vmem:[#allocation5] sm:$0x1] %v1557_v0  ;;  %48 = vst [vmem:[#allocation6] sm:$0x1] %v1557_v0  ;;  %v81_v2 = vld [vmem:[#allocation9] sm:$0xff]  ;;  %455 = vxpose.xlu1.b32.start [1/4] (short) %v85_v1, 128  ;;  %v150_v3 = vmul.f32 %v85_v1, %v85_v1  ;;  %v82_v7 = vld [vmem:[#allocation9 + $0x8] sm:$0xff]  ;;  %v151_v8 = vmul.f32 %v86_v6, %v86_v6  ;;  %v122_v9 = vadd.f32 %v86_v6, %v85_v1 }
  0x28   :  { %44 = vst [vmem:[#allocation2] sm:$0x1] %v1557_v0  ;;  %45 = vst [vmem:[#allocation3] sm:$0x1] %v1557_v0  ;;  %181 = vxpose.xlu0.b32.start [1/4] (short) %v81_v2, 128  ;;  %v89_v4 = vsub.f32 %v81_v2, %v85_v1  ;;  %v134_v5 = vmul.f32 %v81_v2, %v81_v2  ;;  %v90_v10 = vsub.f32 %v82_v7, %v86_v6  ;;  %v87_v12 = vld [vmem:[#allocation12 + $0x10] sm:$0xff]  ;;  %v88_v25 = vld [vmem:[#allocation12 + $0x18] sm:$0xff] }
  0x29   :  { %46 = vst [vmem:[#allocation4] sm:$0x1] %v1557_v0  ;;  %v135_v11 = vmul.f32 %v82_v7, %v82_v7  ;;  %v83_v13 = vld [vmem:[#allocation9 + $0x10] sm:$0xff]  ;;  %v110_v15 = vadd.f32 %v82_v7, %v81_v2  ;;  %v152_v16 = vmul.f32 %v87_v12, %v87_v12  ;;  %v154_v18 = vadd.f32 %v151_v8, %v150_v3  ;;  %v84_v30 = vld [vmem:[#allocation9 + $0x18] sm:$0xff] }
  0x2a   :  { %v94_v14 = vmul.f32 %v89_v4, %v89_v4  ;;  %v91_v17 = vsub.f32 %v83_v13, %v87_v12  ;;  %v95_v19 = vmul.f32 %v90_v10, %v90_v10  ;;  %v123_v21 = vadd.f32 %v122_v9, %v87_v12 }
  0x2b   :  { %v138_v20 = vadd.f32 %v135_v11, %v134_v5  ;;  %456 = vxpose.xlu1.b32.cont [2/4] (short) %v86_v6, 128  ;;  %v136_v23 = vmul.f32 %v83_v13, %v83_v13  ;;  %v111_v24 = vadd.f32 %v110_v15, %v83_v13  ;;  %v155_v27 = vadd.f32 %v154_v18, %v152_v16 }
  0x2c   :  { %182 = vxpose.xlu0.b32.cont [2/4] (short) %v82_v7, 128  ;;  %v96_v22 = vmul.f32 %v91_v17, %v91_v17  ;;  %v98_v26 = vadd.f32 %v95_v19, %v94_v14  ;;  %v153_v28 = vmul.f32 %v88_v25, %v88_v25  ;;  %v124_v29 = vadd.f32 %v123_v21, %v88_v25 }
  0x2d   :  { %v139_v31 = vadd.f32 %v138_v20, %v136_v23  ;;  %v92_v32 = vsub.f32 %v84_v30, %v88_v25  ;;  %v137_v33 = vmul.f32 %v84_v30, %v84_v30  ;;  %v112_v34 = vadd.f32 %v111_v24, %v84_v30 }
  0x2e   :  { %v99_v35 = vadd.f32 %v98_v26, %v96_v22  ;;  %v125_v36 = vrot.slane %v124_v29, 4  ;;  %v156_v37 = vadd.f32 %v155_v27, %v153_v28  ;;  %v1383_v38 = vpack.c.bf16 %v82_v7, %v81_v2  ;;  %v121_v62 = vld [vmem:[#allocation5] sm:$0x1] }
  0x2f   :  { %457 = vxpose.xlu1.b32.cont [3/4] (short) %v87_v12, 128  ;;  %v97_v39 = vmul.f32 %v92_v32, %v92_v32  ;;  %v113_v40 = vrot.slane %v112_v34, 4  ;;  %v140_v41 = vadd.f32 %v139_v31, %v137_v33  ;;  %v1391_v42 = vpack.c.bf16 %v86_v6, %v85_v1  ;;  %v109_v5 = vld [vmem:[#allocation3] sm:$0x1]  ;;  %v149_v6 = vld [vmem:[#allocation6] sm:$0x1] }
  0x30   :  { %183 = vxpose.xlu0.b32.cont [3/4] (short) %v83_v13, 128  ;;  %v126_v43 = vadd.f32 %v125_v36, %v124_v29  ;;  %v157_v44 = vrot.slane %v156_v37, 4  ;;  %1384 = vmatprep.subr.bf16.mxu0 %v1383_v38  ;;  %v1387_v45 = vpack.c.bf16 %v84_v30, %v83_v13  ;;  %v1395_v46 = vpack.c.bf16 %v88_v25, %v87_v12  ;;  %v133_v12 = vld [vmem:[#allocation4] sm:$0x1]  ;;  %v93_v17 = vld [vmem:[#allocation2] sm:$0x1] }
  0x31   :  { %v100_v47 = vadd.f32 %v99_v35, %v97_v39  ;;  %v114_v48 = vadd.f32 %v113_v40, %v112_v34  ;;  %v141_v49 = vrot.slane %v140_v41, 4  ;;  %1386 = vmatpush3.bf16.msra.mxu0 %v1383_v38  ;;  %1392 = vmatprep.subr.bf16.mxu1 %v1391_v42  ;;  %vm716_vm3 = vcmask 1040384  }
  0x32   :  { %v127_v50 = vrot.slane %v126_v43, 2  ;;  %v158_v51 = vadd.f32 %v157_v44, %v156_v37  ;;  %1388 = vmatprep.subr.bf16.mxu0 %v1387_v45  ;;  %1394 = vmatpush3.bf16.msra.mxu1 %v1391_v42  ;;  %vm1559_vm4 = vmmov 0  }
  0x33   :  { %458 = vxpose.xlu1.b32.end [4/4] (short) %v88_v25, 128  ;;  %v101_v52 = vrot.slane %v100_v47, 4  ;;  %v115_v53 = vrot.slane %v114_v48, 2  ;;  %v142_v54 = vadd.f32 %v141_v49, %v140_v41  ;;  %1396 = vmatprep.subr.bf16.mxu1 %v1395_v46 }
  0x34   :  { %184 = vxpose.xlu0.b32.end [4/4] (short) %v84_v30, 128  ;;  %v128_v55 = vadd.f32 %v127_v50, %v126_v43  ;;  %v159_v56 = vrot.slane %v158_v51, 2 }
  0x35   :  { %v102_v57 = vadd.f32 %v101_v52, %v100_v47  ;;  %v116_v58 = vadd.f32 %v115_v53, %v114_v48  ;;  %v143_v59 = vrot.slane %v142_v54, 2  ;;  %1390 = vmatpush3.bf16.msra.mxu0 %v1387_v45  ;;  %v1558_v53 = vmov 0.0|0.0  }
  0x36   :  { %v129_v60 = vrot.slane %v128_v55, 1  ;;  %v160_v61 = vadd.f32 %v159_v56, %v158_v51  ;;  %1398 = vmatpush3.bf16.msra.mxu1 %v1395_v46  ;;  %1399 = vmatprep.subr.bf16.mxu0 %v1558_v53 }
  0x37   :  { %v103_v63 = vrot.slane %v102_v57, 2  ;;  %v117_v1 = vrot.slane %v116_v58, 1  ;;  %v144_v2 = vadd.f32 %v143_v59, %v142_v54  ;;  %1423 = vmatprep.subr.bf16.mxu1 %v1558_v53 }
  0x38   :  { %v130_v3 = vadd.f32 %v129_v60, %v128_v55  ;;  %v161_v4 = vrot.slane %v160_v61, 1 }
  0x39   :  { %v104_v7 = vadd.f32 %v103_v63, %v102_v57  ;;  %v118_v8 = vadd.f32 %v117_v1, %v116_v58  ;;  %v145_v9 = vrot.slane %v144_v2, 1 }
  0x3a   :  { %v131_v10 = vadd.f32 %v130_v3, %v121_v62  ;;  %v162_v11 = vadd.f32 %v161_v4, %v160_v61 }
  0x3b   :  { %v105_v13 = vrot.slane %v104_v7, 1  ;;  %v119_v14 = vadd.f32 %v118_v8, %v109_v5  ;;  %v146_v15 = vadd.f32 %v145_v9, %v144_v2 }
  0x3c   :  { %132 = vst [vmem:[#allocation5] sm:$0x1] %v131_v10  ;;  %v163_v16 = vadd.f32 %v162_v11, %v149_v6 }
  0x3d   :  { %v106_v18 = vadd.f32 %v105_v13, %v104_v7  ;;  %120 = vst [vmem:[#allocation3] sm:$0x1] %v119_v14  ;;  %v147_v19 = vadd.f32 %v146_v15, %v133_v12 }
  0x3e   :  { %164 = vst [vmem:[#allocation6] sm:$0x1] %v163_v16 }
  0x3f   :  { %v107_v20 = vadd.f32 %v106_v18, %v93_v17  ;;  %148 = vst [vmem:[#allocation4] sm:$0x1] %v147_v19 }
  0x41   :  { %108 = vst [vmem:[#allocation2] sm:$0x1] %v107_v20 }
  0x44   :  { %v728_v54 = vld [vmem:[#allocation3] sm:$0x1] }
  0x45   :  { %v1639_v55 = vmul.f32 0.03125, %v728_v54 }
  0x46   :  { %v730_v58 = vld [vmem:[#allocation4] sm:$0x1] }
  0x47   :  { %v731_v56 = vmul.f32 32.0, %v1639_v55 }
  0x48   :  { %v715_v9 = vld [vmem:[#allocation2] sm:$0x1] }
  0x49   :  { %v732_v57 = vmul.f32 %v731_v56, %v1639_v55  ;;  %v717_v10 = vsel %vm716_vm3, %v715_v9, 0.0 }
  0x4b   :  { %v733_v59 = vsub.f32 %v730_v58, %v732_v57 }
  0x4d   :  { %v734_v60 = vmul.f32 0.032258064, %v733_v59 }
  0x4f   :  { %v735_v61 = vadd.f32 0.0001, %v734_v60  ;;  %v910_v7 = vmul.f32 %v734_v60, %v734_v60 }
  0x51   :  { %1477 = vrsqrt.f32 %v735_v61  ;;  %vm738_vm1 = vcmp.eq.f32.partialorder %v735_v61, inf  ;;  %v741_v1 = vand.u32 2147483648, %v735_v61  ;;  %vm740_vm2 = vcmp.eq.f32.partialorder %v735_v61, 0.0 }
  0x52   :  { %v911_v8 = vsel %vm716_vm3, %v910_v7, 0.0 }
  0x5b   :  { %v1478_v62 = vpop.eup %1477 }
  0x5c   :  { %v737_v63 = vmul.f32 %v1478_v62, %v735_v61 }
  0x5e   :  { %v739_v2 = vsel %vm738_vm1, %v735_v61, %v737_v63 }
  0x5f   :  { %v742_v3 = vsel %vm740_vm2, %v741_v1, %v739_v2 }
  0x60   :  { %v743_v4 = vsub.f32 1.0, %v742_v3 }
  0x62   :  { %v744_v5 = vmax.f32 %v743_v4, 0.0 }
  0x64   :  { %v745_v6 = vsel %vm716_vm3, %v744_v5, 0.0 }
  0x8a   :  { %746 = vadd.xlane.f32.xlu1 %v745_v6 }
  0x8e   :  { %912 = vadd.xlane.f32.xlu1 %v911_v8 }
  0x91   :  { %718 = vadd.xlane.f32.xlu0 %v717_v10 }
  0xa7   :  { %v471_v21 = vpop.trf.xlu1 }
  0xa8   :  { %v197_v22 = vpop.trf.xlu0  ;;  %1289 = vmatprep.mubr.msk.f32.mxu1 %vm213_vm0, %v471_v21 }
  0xa9   :  { %1257 = vmatprep.mubr.msk.f32.mxu0 %vm213_vm0, %v197_v22 }
  0xab   :  { %v472_v23 = vpop.trf.xlu1 }
  0xac   :  { %v198_v24 = vpop.trf.xlu0  ;;  %1290 = vmatmul.mubr.msk.f32.vlgmr.msra.gmra.mrb[0].mxu1 %vm213_vm0, %v472_v23 }
  0xad   :  { %1258 = vmatmul.mubr.msk.f32.vlgmr.msra.gmra.mrb[0].mxu0 %vm213_vm0, %v198_v24 }
  0xaf   :  { %v473_v25 = vpop.trf.xlu1 }
  0xb0   :  { %v199_v26 = vpop.trf.xlu0  ;;  %1292 = vmatprep.mubr.msk.f32.mxu1 %vm213_vm0, %v473_v25 }
  0xb1   :  { %1260 = vmatprep.mubr.msk.f32.mxu0 %vm213_vm0, %v199_v26 }
  0xb3   :  { %v474_v27 = vpop.trf.xlu1 }
  0xb4   :  { %v200_v28 = vpop.trf.xlu0  ;;  %1293 = vmatmul.mubr.msk.f32.gmra.mrb[2].mxu1 %vm213_vm0, %v474_v27 }
  0xb5   :  { %1261 = vmatmul.mubr.msk.f32.gmra.mrb[2].mxu0 %vm213_vm0, %v200_v28 }
  0xb7   :  { %v475_v29 = vpop.trf.xlu1 }
  0xb8   :  { %v201_v30 = vpop.trf.xlu0  ;;  %1295 = vmatprep.mubr.msk.f32.mxu1 %vm213_vm0, %v475_v29 }
  0xb9   :  { %1263 = vmatprep.mubr.msk.f32.mxu0 %vm213_vm0, %v201_v30 }
  0xbb   :  { %v476_v31 = vpop.trf.xlu1 }
  0xbc   :  { %v202_v32 = vpop.trf.xlu0  ;;  %1296 = vmatmul.mubr.msk.f32.gmra.mrb[4].mxu1 %vm213_vm0, %v476_v31 }
  0xbd   :  { %1264 = vmatmul.mubr.msk.f32.gmra.mrb[4].mxu0 %vm213_vm0, %v202_v32 }
  0xbf   :  { %v477_v33 = vpop.trf.xlu1 }
  0xc0   :  { %v203_v34 = vpop.trf.xlu0  ;;  %1298 = vmatprep.mubr.msk.f32.mxu1 %vm213_vm0, %v477_v33 }
  0xc1   :  { %1266 = vmatprep.mubr.msk.f32.mxu0 %vm213_vm0, %v203_v34 }
  0xc3   :  { %v478_v35 = vpop.trf.xlu1 }
  0xc4   :  { %v204_v36 = vpop.trf.xlu0  ;;  %1299 = vmatmul.mubr.msk.f32.gmra.mrb[6].mxu1 %vm213_vm0, %v478_v35 }
  0xc5   :  { %1267 = vmatmul.mubr.msk.f32.gmra.mrb[6].mxu0 %vm213_vm0, %v204_v36 }
  0xc7   :  { %v479_v37 = vpop.trf.xlu1 }
  0xc8   :  { %v205_v38 = vpop.trf.xlu0  ;;  %1301 = vmatprep.mubr.msk.f32.mxu1 %vm213_vm0, %v479_v37 }
  0xc9   :  { %1269 = vmatprep.mubr.msk.f32.mxu0 %vm213_vm0, %v205_v38 }
  0xcb   :  { %v480_v39 = vpop.trf.xlu1 }
  0xcc   :  { %v206_v40 = vpop.trf.xlu0  ;;  %1302 = vmatmul.mubr.msk.f32.gmra.mrb[8].mxu1 %vm213_vm0, %v480_v39 }
  0xcd   :  { %1270 = vmatmul.mubr.msk.f32.gmra.mrb[8].mxu0 %vm213_vm0, %v206_v40 }
  0xcf   :  { %v481_v41 = vpop.trf.xlu1 }
  0xd0   :  { %v207_v42 = vpop.trf.xlu0  ;;  %1304 = vmatprep.mubr.msk.f32.mxu1 %vm213_vm0, %v481_v41 }
  0xd1   :  { %1272 = vmatprep.mubr.msk.f32.mxu0 %vm213_vm0, %v207_v42 }
  0xd3   :  { %v482_v43 = vpop.trf.xlu1 }
  0xd4   :  { %v208_v44 = vpop.trf.xlu0  ;;  %1305 = vmatmul.mubr.msk.f32.gmra.mrb[10].mxu1 %vm213_vm0, %v482_v43 }
  0xd5   :  { %1273 = vmatmul.mubr.msk.f32.gmra.mrb[10].mxu0 %vm213_vm0, %v208_v44 }
  0xd7   :  { %v483_v45 = vpop.trf.xlu1 }
  0xd8   :  { %v209_v46 = vpop.trf.xlu0  ;;  %1307 = vmatprep.mubr.msk.f32.mxu1 %vm213_vm0, %v483_v45 }
  0xd9   :  { %1275 = vmatprep.mubr.msk.f32.mxu0 %vm213_vm0, %v209_v46 }
  0xdb   :  { %v484_v47 = vpop.trf.xlu1 }
  0xdc   :  { %v210_v48 = vpop.trf.xlu0  ;;  %1308 = vmatmul.mubr.msk.f32.gmra.mrb[12].mxu1 %vm213_vm0, %v484_v47 }
  0xdd   :  { %1276 = vmatmul.mubr.msk.f32.gmra.mrb[12].mxu0 %vm213_vm0, %v210_v48 }
  0xdf   :  { %v485_v49 = vpop.trf.xlu1 }
  0xe0   :  { %v211_v50 = vpop.trf.xlu0  ;;  %1310 = vmatprep.mubr.msk.f32.mxu1 %vm213_vm0, %v485_v49 }
  0xe1   :  { %1278 = vmatprep.mubr.msk.f32.mxu0 %vm213_vm0, %v211_v50 }
  0xe3   :  { %v486_v51 = vpop.trf.xlu1 }
  0xe4   :  { %v212_v52 = vpop.trf.xlu0  ;;  %1311 = vmatmul.mubr.msk.f32.gmra.mrb[14].mxu1 %vm213_vm0, %v486_v51 }
  0xe5   :  { %1279 = vmatmul.mubr.msk.f32.gmra.mrb[14].mxu0 %vm213_vm0, %v212_v52  ;;  %1380 = vmatprep.mubr.msk.f32.mxu1 %vm1559_vm4, %v1557_v0 }
  0xe6   :  { %1345 = vmatprep.mubr.msk.f32.mxu0 %vm1559_vm4, %v1557_v0 }
 0x17f   :  { %v1291_v12 = vpop.f32.mrb[0].mxu1 }
 0x180   :  { %v1259_v11 = vpop.f32.mrb[0].mxu0  ;;  %v968_v15 = vmul.f32 %v1291_v12, %v1291_v12  ;;  %v601_v16 = vpop.f32.mrb[1].mxu1 }
 0x181   :  { %v773_v13 = vmul.f32 %v1259_v11, %v1259_v11  ;;  %v328_v14 = vpop.f32.mrb[1].mxu0  ;;  %v967_v19 = vmul.f32 %v601_v16, %v601_v16  ;;  %v1424_v20 = vpack.c.bf16 %v1291_v12, %v601_v16 }
 0x182   :  { %v772_v17 = vmul.f32 %v328_v14, %v328_v14  ;;  %v1400_v18 = vpack.c.bf16 %v1259_v11, %v328_v14 }
 0x183   :  { %v983_v22 = vadd.f32 %v968_v15, %v967_v19  ;;  %1425 = vmatpush3.bf16.msra.mxu1 %v1424_v20 }
 0x184   :  { %v788_v21 = vadd.f32 %v773_v13, %v772_v17  ;;  %1401 = vmatpush3.bf16.msra.mxu0 %v1400_v18  ;;  %1426 = vmatprep.subr.bf16.mxu1 %v1558_v53 }
 0x185   :  { %1402 = vmatprep.subr.bf16.mxu0 %v1558_v53 }
 0x187   :  { %v1294_v23 = vpop.f32.mrb[2].mxu1 }
 0x188   :  { %v1262_v0 = vpop.f32.mrb[2].mxu0  ;;  %v970_v24 = vmul.f32 %v1294_v23, %v1294_v23  ;;  %v611_v26 = vpop.f32.mrb[3].mxu1 }
 0x189   :  { %v338_v25 = vpop.f32.mrb[3].mxu0  ;;  %v969_v29 = vmul.f32 %v611_v26, %v611_v26  ;;  %v1427_v30 = vpack.c.bf16 %v1294_v23, %v611_v26  ;;  %v775_v31 = vmul.f32 %v1262_v0, %v1262_v0 }
 0x18a   :  { %v774_v27 = vmul.f32 %v338_v25, %v338_v25  ;;  %v1403_v28 = vpack.c.bf16 %v1262_v0, %v338_v25 }
 0x18b   :  { %v984_v33 = vadd.f32 %v983_v22, %v969_v29  ;;  %1428 = vmatpush3.bf16.msra.mxu1 %v1427_v30 }
 0x18c   :  { %v789_v32 = vadd.f32 %v788_v21, %v774_v27  ;;  %1404 = vmatpush3.bf16.msra.mxu0 %v1403_v28  ;;  %1429 = vmatprep.subr.bf16.mxu1 %v1558_v53 }
 0x18d   :  { %1405 = vmatprep.subr.bf16.mxu0 %v1558_v53  ;;  %v985_v35 = vadd.f32 %v984_v33, %v970_v24 }
 0x18e   :  { %v790_v34 = vadd.f32 %v789_v32, %v775_v31 }
 0x18f   :  { %v1297_v37 = vpop.f32.mrb[4].mxu1 }
 0x190   :  { %v1265_v36 = vpop.f32.mrb[4].mxu0  ;;  %v972_v38 = vmul.f32 %v1297_v37, %v1297_v37  ;;  %v621_v40 = vpop.f32.mrb[5].mxu1 }
 0x191   :  { %v348_v39 = vpop.f32.mrb[5].mxu0  ;;  %v971_v43 = vmul.f32 %v621_v40, %v621_v40  ;;  %v1430_v44 = vpack.c.bf16 %v1297_v37, %v621_v40  ;;  %v777_v45 = vmul.f32 %v1265_v36, %v1265_v36 }
 0x192   :  { %v776_v41 = vmul.f32 %v348_v39, %v348_v39  ;;  %v1406_v42 = vpack.c.bf16 %v1265_v36, %v348_v39 }
 0x193   :  { %v986_v47 = vadd.f32 %v985_v35, %v971_v43  ;;  %1431 = vmatpush3.bf16.msra.mxu1 %v1430_v44 }
 0x194   :  { %v791_v46 = vadd.f32 %v790_v34, %v776_v41  ;;  %1407 = vmatpush3.bf16.msra.mxu0 %v1406_v42  ;;  %1432 = vmatprep.subr.bf16.mxu1 %v1558_v53 }
 0x195   :  { %1408 = vmatprep.subr.bf16.mxu0 %v1558_v53  ;;  %v987_v49 = vadd.f32 %v986_v47, %v972_v38 }
 0x196   :  { %v792_v48 = vadd.f32 %v791_v46, %v777_v45  ;;  %v923_v46 = vld [vmem:[#allocation5] sm:$0x1] }
 0x197   :  { %v1300_v51 = vpop.f32.mrb[6].mxu1 }
 0x198   :  { %v1268_v50 = vpop.f32.mrb[6].mxu0  ;;  %v974_v52 = vmul.f32 %v1300_v51, %v1300_v51  ;;  %v631_v56 = vpop.f32.mrb[7].mxu1 }
 0x199   :  { %v358_v54 = vpop.f32.mrb[7].mxu0  ;;  %v973_v59 = vmul.f32 %v631_v56, %v631_v56  ;;  %v1433_v60 = vpack.c.bf16 %v1300_v51, %v631_v56  ;;  %v779_v61 = vmul.f32 %v1268_v50, %v1268_v50  ;;  %v1662_v56 = vmul.f32 0.03125, %v923_v46 }
 0x19a   :  { %v778_v57 = vmul.f32 %v358_v54, %v358_v54  ;;  %v1409_v58 = vpack.c.bf16 %v1268_v50, %v358_v54 }
 0x19b   :  { %v988_v63 = vadd.f32 %v987_v49, %v973_v59  ;;  %1434 = vmatpush3.bf16.msra.mxu1 %v1433_v60 }
 0x19c   :  { %v793_v62 = vadd.f32 %v792_v48, %v778_v57  ;;  %1410 = vmatpush3.bf16.msra.mxu0 %v1409_v58  ;;  %1435 = vmatprep.subr.bf16.mxu1 %v1558_v53 }
 0x19d   :  { %1411 = vmatprep.subr.bf16.mxu0 %v1558_v53  ;;  %v989_v2 = vadd.f32 %v988_v63, %v974_v52 }
 0x19e   :  { %v794_v1 = vadd.f32 %v793_v62, %v779_v61  ;;  %v747_v61 = vpop.xlane.xlu1 %746 }
 0x19f   :  { %v1303_v4 = vpop.f32.mrb[8].mxu1  ;;  %v748_v62 = vrot.slane %v747_v61, 4 }
 0x1a0   :  { %v1271_v3 = vpop.f32.mrb[8].mxu0  ;;  %v976_v5 = vmul.f32 %v1303_v4, %v1303_v4  ;;  %v641_v7 = vpop.f32.mrb[9].mxu1 }
 0x1a1   :  { %v368_v6 = vpop.f32.mrb[9].mxu0  ;;  %v975_v10 = vmul.f32 %v641_v7, %v641_v7  ;;  %v1436_v11 = vpack.c.bf16 %v1303_v4, %v641_v7  ;;  %v781_v12 = vmul.f32 %v1271_v3, %v1271_v3  ;;  %v749_v63 = vadd.f32 %v748_v62, %v747_v61 }
 0x1a2   :  { %v780_v8 = vmul.f32 %v368_v6, %v368_v6  ;;  %v1412_v9 = vpack.c.bf16 %v1271_v3, %v368_v6 }
 0x1a3   :  { %v990_v14 = vadd.f32 %v989_v2, %v975_v10  ;;  %1437 = vmatpush3.bf16.msra.mxu1 %v1436_v11  ;;  %v750_v3 = vrot.slane %v749_v63, 2 }
 0x1a4   :  { %v795_v13 = vadd.f32 %v794_v1, %v780_v8  ;;  %1413 = vmatpush3.bf16.msra.mxu0 %v1412_v9  ;;  %1438 = vmatprep.subr.bf16.mxu1 %v1558_v53  ;;  %v719_v1 = vpop.xlane.xlu0 %718 }
 0x1a5   :  { %1414 = vmatprep.subr.bf16.mxu0 %v1558_v53  ;;  %v991_v16 = vadd.f32 %v990_v14, %v976_v5  ;;  %v720_v2 = vrot.slane %v719_v1, 4  ;;  %v751_v7 = vadd.f32 %v750_v3, %v749_v63  ;;  %v925_v14 = vld [vmem:[#allocation6] sm:$0x1] }
 0x1a6   :  { %v796_v15 = vadd.f32 %v795_v13, %v781_v12  ;;  %v926_v12 = vmul.f32 32.0, %v1662_v56 }
 0x1a7   :  { %v1306_v18 = vpop.f32.mrb[10].mxu1  ;;  %v721_v4 = vadd.f32 %v720_v2, %v719_v1  ;;  %v752_v9 = vrot.slane %v751_v7, 1 }
 0x1a8   :  { %v1274_v17 = vpop.f32.mrb[10].mxu0  ;;  %v978_v19 = vmul.f32 %v1306_v18, %v1306_v18  ;;  %v651_v21 = vpop.f32.mrb[11].mxu1  ;;  %v927_v13 = vmul.f32 %v926_v12, %v1662_v56 }
 0x1a9   :  { %v378_v20 = vpop.f32.mrb[11].mxu0  ;;  %v977_v23 = vmul.f32 %v651_v21, %v651_v21  ;;  %v1439_v24 = vpack.c.bf16 %v1306_v18, %v651_v21  ;;  %v783_v25 = vmul.f32 %v1274_v17, %v1274_v17  ;;  %v722_v5 = vrot.slane %v721_v4, 2 }
 0x1aa   :  { %v782_v22 = vmul.f32 %v378_v20, %v378_v20  ;;  %v1415_v0 = vpack.c.bf16 %v1274_v17, %v378_v20  ;;  %v753_v11 = vadd.f32 %v752_v9, %v751_v7  ;;  %v893_v21 = vmul.f32 %v1639_v55, %v1639_v55 }
 0x1ab   :  { %v992_v27 = vadd.f32 %v991_v16, %v977_v23  ;;  %1440 = vmatpush3.bf16.msra.mxu1 %v1439_v24  ;;  %v723_v6 = vadd.f32 %v722_v5, %v721_v4 }
 0x1ac   :  { %v797_v26 = vadd.f32 %v796_v15, %v782_v22  ;;  %1416 = vmatpush3.bf16.msra.mxu0 %v1415_v0  ;;  %1441 = vmatprep.subr.bf16.mxu1 %v1558_v53  ;;  %v928_v15 = vsub.f32 %v925_v14, %v927_v13  ;;  %v894_v23 = vsel %vm716_vm3, %v893_v21, 0.0 }
 0x1ad   :  { %1417 = vmatprep.subr.bf16.mxu0 %v1558_v53  ;;  %v993_v29 = vadd.f32 %v992_v27, %v978_v19  ;;  %v724_v8 = vrot.slane %v723_v6, 1  ;;  %895 = vadd.xlane.f32.xlu0 %v894_v23  ;;  %v913_v27 = vpop.xlane.xlu1 %912 }
 0x1ae   :  { %v798_v28 = vadd.f32 %v797_v26, %v783_v25  ;;  %v929_v16 = vmul.f32 0.032258064, %v928_v15 }
 0x1af   :  { %v1309_v31 = vpop.f32.mrb[12].mxu1  ;;  %v725_v10 = vadd.f32 %v724_v8, %v723_v6 }
 0x1b0   :  { %v1277_v30 = vpop.f32.mrb[12].mxu0  ;;  %v980_v32 = vmul.f32 %v1309_v31, %v1309_v31  ;;  %v661_v34 = vpop.f32.mrb[13].mxu1  ;;  %v930_v17 = vadd.f32 0.0001, %v929_v16 }
 0x1b1   :  { %v388_v33 = vpop.f32.mrb[13].mxu0  ;;  %v979_v37 = vmul.f32 %v661_v34, %v661_v34  ;;  %v1442_v38 = vpack.c.bf16 %v1309_v31, %v661_v34  ;;  %v785_v39 = vmul.f32 %v1277_v30, %v1277_v30  ;;  %1447 = vpush %v725_v10 }
 0x1b2   :  { %v784_v35 = vmul.f32 %v388_v33, %v388_v33  ;;  %v1418_v36 = vpack.c.bf16 %v1277_v30, %v388_v33  ;;  %1449 = vpush %v753_v11  ;;  %1479 = vrsqrt.f32 %v930_v17  ;;  %vm933_vm5 = vcmp.eq.f32.partialorder %v930_v17, inf }
 0x1b3   :  { %v994_v41 = vadd.f32 %v993_v29, %v979_v37  ;;  %1443 = vmatpush3.bf16.msra.mxu1 %v1442_v38  ;;  %v936_v20 = vand.u32 2147483648, %v930_v17  ;;  %vm935_vm6 = vcmp.eq.f32.partialorder %v930_v17, 0.0 }
 0x1b4   :  { %v799_v40 = vadd.f32 %v798_v28, %v784_v35  ;;  %1419 = vmatpush3.bf16.msra.mxu0 %v1418_v36  ;;  %1444 = vmatprep.subr.bf16.mxu1 %v1558_v53 }
 0x1b5   :  { %1420 = vmatprep.subr.bf16.mxu0 %v1558_v53  ;;  %v995_v43 = vadd.f32 %v994_v41, %v980_v32  ;;  %v1088_v41 = vmul.f32 %v1662_v56, %v1662_v56 }
 0x1b6   :  { %v800_v42 = vadd.f32 %v799_v40, %v785_v39 }
 0x1b7   :  { %v1312_v45 = vpop.f32.mrb[14].mxu1 }
 0x1b8   :  { %v1280_v44 = vpop.f32.mrb[14].mxu0  ;;  %v982_v47 = vmul.f32 %v1312_v45, %v1312_v45  ;;  %v671_v49 = vpop.f32.mrb[15].mxu1 }
 0x1b9   :  { %v398_v48 = vpop.f32.mrb[15].mxu0  ;;  %v981_v52 = vmul.f32 %v671_v49, %v671_v49  ;;  %v1445_v54 = vpack.c.bf16 %v1312_v45, %v671_v49  ;;  %v787_v57 = vmul.f32 %v1280_v44, %v1280_v44  ;;  %v1089_v45 = vsel %vm716_vm3, %v1088_v41, 0.0 }
 0x1ba   :  { %v786_v50 = vmul.f32 %v398_v48, %v398_v48  ;;  %v1421_v51 = vpack.c.bf16 %v1280_v44, %v398_v48  ;;  %v914_v49 = vrot.slane %v913_v27, 4 }
 0x1bb   :  { %1446 = vmatpush3.bf16.msra.mxu1 %v1445_v54  ;;  %v996_v59 = vadd.f32 %v995_v43, %v981_v52 }
 0x1bc   :  { %1422 = vmatpush3.bf16.msra.mxu0 %v1421_v51  ;;  %v801_v58 = vadd.f32 %v800_v42, %v786_v50  ;;  %v1480_v18 = vpop.eup %1479  ;;  %v1105_v42 = vmul.f32 %v929_v16, %v929_v16  ;;  %v915_v54 = vadd.f32 %v914_v49, %v913_v27 }
 0x1bd   :  { %v997_v60 = vadd.f32 %v996_v59, %v982_v47  ;;  %v932_v19 = vmul.f32 %v1480_v18, %v930_v17 }
 0x1be   :  { %v802_v53 = vadd.f32 %v801_v58, %v787_v57  ;;  %1381 = vmatmul.mubr.f32.vlgmr.msra.gmra.mrb[16].mxu1 %v1662_v56  ;;  %v1106_v46 = vsel %vm716_vm3, %v1105_v42, 0.0  ;;  %v916_v59 = vrot.slane %v915_v54, 2 }
 0x1bf   :  { %1346 = vmatmul.mubr.f32.vlgmr.msra.gmra.mrb[16].mxu0 %v1639_v55  ;;  %v934_v22 = vsel %vm933_vm5, %v930_v17, %v932_v19 }
 0x1c0   :  { %803 = vadd.xlane.f32.xlu1 %v802_v53  ;;  %v937_v0 = vsel %vm935_vm6, %v936_v20, %v934_v22  ;;  %v917_v8 = vadd.f32 %v916_v59, %v915_v54 }
 0x1c1   :  { %v938_v24 = vsub.f32 1.0, %v937_v0 }
 0x1c2   :  { %v918_v0 = vrot.slane %v917_v8, 1 }
 0x1c3   :  { %v939_v25 = vmax.f32 %v938_v24, 0.0 }
 0x1c4   :  { %998 = vadd.xlane.f32.xlu1 %v997_v60 }
 0x1c5   :  { %v940_v26 = vsel %vm716_vm3, %v939_v25, 0.0 }
 0x1c6   :  { %941 = vadd.xlane.f32.xlu0 %v940_v26 }
 0x1e2   :  { %s1680_s1 = spop %1447 }
 0x1e3   :  { %s1450_s6 = spop %1449  ;;  %s727_s28 = smul.f32 0.00024414063, %s1680_s1 }
 0x1e4   :  { %s755_s23 = smul.f32 0.00390625, %s1450_s6 }
 0x1e5   :  { %s1118_s5 = smul.f32 25.0, %s727_s28 }
 0x24d   :  { %v804_v28 = vpop.xlane.xlu1 %803 }
 0x24e   :  { %v805_v29 = vrot.slane %v804_v28, 4 }
 0x250   :  { %v806_v30 = vadd.f32 %v805_v29, %v804_v28 }
 0x251   :  { %v999_v47 = vpop.xlane.xlu1 %998 }
 0x252   :  { %v807_v31 = vrot.slane %v806_v30, 2  ;;  %v1000_v51 = vrot.slane %v999_v47, 4 }
 0x254   :  { %v808_v32 = vadd.f32 %v807_v31, %v806_v30  ;;  %v1001_v57 = vadd.f32 %v1000_v51, %v999_v47  ;;  %v919_v30 = vadd.f32 %v918_v0, %v917_v8 }
 0x256   :  { %v809_v33 = vrot.slane %v808_v32, 1  ;;  %v1002_v1 = vrot.slane %v1001_v57, 2 }
 0x258   :  { %v810_v34 = vadd.f32 %v809_v33, %v808_v32  ;;  %v1003_v14 = vadd.f32 %v1002_v1, %v1001_v57 }
 0x25a   :  { %1451 = vpush %v810_v34  ;;  %v1004_v28 = vrot.slane %v1003_v14, 1 }
 0x28b   :  { %s1452_s7 = spop %1451 }
 0x291   :  { %v1073_v36 = vpop.f32.mrb[16].mxu1 }
 0x292   :  { %v878_v35 = vpop.f32.mrb[16].mxu0  ;;  %v1077_v38 = vmul.f32 %v1073_v36, %v1662_v56  ;;  %v1382_v40 = vpop.f32.mrb[17].mxu1 }
 0x293   :  { %v882_v37 = vmul.f32 %v878_v35, %v1639_v55  ;;  %v1347_v39 = vpop.f32.mrb[17].mxu0  ;;  %v896_v55 = vpop.xlane.xlu0 %895  ;;  %v1005_v35 = vadd.f32 %v1004_v28, %v1003_v14 }
 0x294   :  { %v1078_v44 = vsel %vm716_vm3, %v1077_v38, 0.0  ;;  %v897_v50 = vrot.slane %v896_v55, 4 }
 0x295   :  { %v883_v43 = vsel %vm716_vm3, %v882_v37, 0.0  ;;  %1079 = vadd.xlane.f32.xlu0 %v1078_v44 }
 0x296   :  { %884 = vadd.xlane.f32.xlu1 %v883_v43  ;;  %v898_v56 = vadd.f32 %v897_v50, %v896_v55 }
 0x297   :  { %v942_v48 = vpop.xlane.xlu0 %941 }
 0x298   :  { %v943_v52 = vrot.slane %v942_v48, 4  ;;  %v899_v53 = vrot.slane %v898_v56, 2 }
 0x299   :  { %1107 = vadd.xlane.f32.xlu0 %v1106_v46 }
 0x29a   :  { %1090 = vadd.xlane.f32.xlu1 %v1089_v45  ;;  %v944_v58 = vadd.f32 %v943_v52, %v942_v48  ;;  %v900_v7 = vadd.f32 %v899_v53, %v898_v56 }
 0x29c   :  { %v945_v2 = vrot.slane %v944_v58, 2  ;;  %v901_v19 = vrot.slane %v900_v7, 1 }
 0x29e   :  { %v946_v13 = vadd.f32 %v945_v2, %v944_v58  ;;  %v902_v29 = vadd.f32 %v901_v19, %v900_v7 }
 0x2a0   :  { %v947_v23 = vrot.slane %v946_v13, 1 }
 0x2a2   :  { %v948_v33 = vadd.f32 %v947_v23, %v946_v13 }
 0x322   :  { %v1080_v61 = vpop.xlane.xlu0 %1079 }
 0x323   :  { %v885_v60 = vpop.xlane.xlu1 %884  ;;  %v1081_v63 = vrot.slane %v1080_v61, 4 }
 0x324   :  { %v886_v62 = vrot.slane %v885_v60, 4 }
 0x325   :  { %v1082_v4 = vadd.f32 %v1081_v63, %v1080_v61 }
 0x326   :  { %v887_v3 = vadd.f32 %v886_v62, %v885_v60  ;;  %v1108_v6 = vpop.xlane.xlu0 %1107 }
 0x327   :  { %v1091_v5 = vpop.xlane.xlu1 %1090  ;;  %v1083_v10 = vrot.slane %v1082_v4, 2  ;;  %v1109_v12 = vrot.slane %v1108_v6, 4 }
 0x328   :  { %v888_v9 = vrot.slane %v887_v3, 2  ;;  %v1092_v11 = vrot.slane %v1091_v5, 4 }
 0x329   :  { %v1110_v16 = vadd.f32 %v1109_v12, %v1108_v6  ;;  %v1084_v18 = vadd.f32 %v1083_v10, %v1082_v4 }
 0x32a   :  { %v1093_v15 = vadd.f32 %v1092_v11, %v1091_v5  ;;  %v889_v17 = vadd.f32 %v888_v9, %v887_v3 }
 0x32b   :  { %v1111_v21 = vrot.slane %v1110_v16, 2  ;;  %v1085_v24 = vrot.slane %v1084_v18, 1 }
 0x32c   :  { %v1094_v20 = vrot.slane %v1093_v15, 2  ;;  %v890_v22 = vrot.slane %v889_v17, 1 }
 0x32d   :  { %v1112_v26 = vadd.f32 %v1111_v21, %v1110_v16  ;;  %v1086_v34 = vadd.f32 %v1085_v24, %v1084_v18 }
 0x32e   :  { %v1095_v25 = vadd.f32 %v1094_v20, %v1093_v15  ;;  %v891_v27 = vadd.f32 %v890_v22, %v889_v17 }
 0x32f   :  { %v1113_v32 = vrot.slane %v1112_v26, 1 }
 0x330   :  { %1453 = vpush %v891_v27  ;;  %v1096_v31 = vrot.slane %v1095_v25, 1 }
 0x331   :  { %1455 = vpush %v902_v29  ;;  %v1114_v37 = vadd.f32 %v1113_v32, %v1112_v26 }
 0x332   :  { %1457 = vpush %v919_v30  ;;  %v1097_v36 = vadd.f32 %v1096_v31, %v1095_v25 }
 0x333   :  { %1459 = vpush %v948_v33 }
 0x334   :  { %1461 = vpush %v1005_v35 }
 0x335   :  { %1463 = vpush %v1086_v34 }
 0x336   :  { %1465 = vpush %v1097_v36 }
 0x337   :  { %1467 = vpush %v1114_v37 }
 0x361   :  { %s1454_s8 = spop %1453 }
 0x362   :  { %s904_s9 = smul.f32 64.0, %s1454_s8  ;;  %s1456_s10 = spop %1455 }
 0x363   :  { %s906_s11 = smul.f32 32.0, %s1456_s10  ;;  %s1458_s12 = spop %1457 }
 0x364   :  { %s905_s13 = ssub.f32 %s1452_s7, %s904_s9  ;;  %s1460_s14 = spop %1459 }
 0x365   :  { %s907_s15 = smul.f32 %s906_s11, %s906_s11  ;;  %s1462_s16 = spop %1461 }
 0x366   :  { %s1464_s17 = spop %1463  ;;  %s950_s20 = smul.f32 0.00390625, %s1460_s14 }
 0x367   :  { %s1466_s18 = spop %1465  ;;  %s908_s19 = sadd.f32 %s907_s15, %s905_s13 }
 0x368   :  { %s1099_s21 = smul.f32 64.0, %s1464_s17  ;;  %s1119_s27 = sadd.f32 %s950_s20, %s755_s23 }
 0x369   :  { %s1101_s22 = smul.f32 32.0, %s1466_s18  ;;  %s1468_s0 = spop %1467 }
 0x36a   :  { %s909_s24 = smul.f32 0.0010405828, %s908_s19  ;;  %s1100_s25 = ssub.f32 %s1462_s16, %s1099_s21 }
 0x36b   :  { %s1102_s26 = smul.f32 %s1101_s22, %s1101_s22  ;;  %s1560_s13 = smov [#allocation14]  }
 0x36c   :  { %s921_s30 = ssub.f32 %s909_s24, %s1458_s12  ;;  %s1120_s4 = smul.f32 25.0, %s1119_s27 }
 0x36d   :  { %s1103_s29 = sadd.f32 %s1102_s26, %s1100_s25  ;;  %s1133_s14 = sshll.u32 %s1560_s13, 4  ;;  %s1134_s14 = int_to_ptr.vmem [resolvable:$true] %s1133_s14 }
 0x36e   :  { %s922_s8 = smul.f32 0.0078125, %s921_s30  ;;  %s1121_s10 = sadd.f32 %s1120_s4, %s1118_s5 }
 0x36f   :  { %s1104_s3 = smul.f32 0.0010405828, %s1103_s29  ;;  %s1525_s6 = scalar_lea.vmem %s1134_s14, 128 }
 0x370   :  { %p1526_p2 = scmp.ne.s32.totalorder %s1134_s14, %s1525_s6  ;;  %p1530_p3 = scmp.lt.s32.totalorder %s1134_s14, %s1134_s14 }
 0x371   :  { %s1116_s7 = ssub.f32 %s1104_s3, %s1468_s0  ;;  %p1531_p4 = scmp.lt.s32.totalorder %s1525_s6, %s1525_s6 }
 0x373   :  { %s1117_s9 = smul.f32 0.0078125, %s1116_s7  ;;  %p1532_p5 = por %p1531_p4, %p1530_p3 }
 0x375   :  { %s1122_s11 = sadd.f32 %s1117_s9, %s922_s8  ;;  %p1533_p6 = pnand %p1532_p5, %p1526_p2 }
 0x377   :  { %s1123_s15 = sadd.f32 %s1122_s11, %s1121_s10 }
 0x379   :  { %v1124_v38 = vstv %s1123_s15 }
 0x37a   :  { %1126 = vst [vmem:[#allocation14] sm:$0xff] %v1124_v38 }
 0x37b   :  { %1536 = shalt.err (!%p1533_p6)
}
 0x37c   :  { %s1537_s16 = scalar_lea.hbm %s1697_s2, 128 }
 0x37d   :  { %p1538_p7 = scmp.ne.s32.totalorder %s1697_s2, %s1537_s16  ;;  %p1541_p8 = scmp.lt.u32.totalorder %s1537_s16, %s1697_s2 }
 0x37f   :  { %p1543_p9 = pnand %p1541_p8, %p1538_p7 }
 0x381   :  { %1546 = shalt.err (!%p1543_p9)
}
 0x382   :  { %1136 = dma.vmem_to_hbm [thread:$0]  %s1134_s14, 128, %s1697_s2, [#allocation11]  }
 0x383   :  { %1551 = dma.done.wait [#allocation11], 128  }
 0x384   :  { %1552 = vsyncadd [#allocation11], 4294967168 }
 0x385   :  { %1140 = vsyncpa [#allocation10], 1 }
 0x386   :  { %1141 = vsyncpa [#allocation13], 1 }
 0x387   :  { %1142 = vsyncpa [#allocation11], 1 }

</bundles_post_ra>
